<compile_context>
chip_gen: v5e
topology: v5e:2x2
jax: 0.10.0
libtpu: 0.0.40
codegen_flags: <defaults>
</compile_context>

<pallas_src>
import functools

import jax
import jax.numpy as jnp
from jax.experimental import pallas as pl
from jax.experimental.pallas import tpu as pltpu


def _round_up(x, m):
    return ((x + m - 1) // m) * m


def _patch_embed_kernel(x_ref, w_ref, b_ref, o_ref):
    # x_ref: (tm, K_pad)      bf16 tile of flattened patches
    # w_ref: (K_pad, E_pad)   bf16 projection weight, already (K, E) — plain dot
    # b_ref: (1, E_pad)       f32 bias (resident)
    # o_ref: (tm, E_pad)      output tile
    acc = jnp.dot(x_ref[...], w_ref[...], preferred_element_type=jnp.float32)
    o_ref[...] = (acc + b_ref[...]).astype(o_ref.dtype)


def _vmem_caps():
    """(vmem_limit_bytes, tiling_budget_bytes), generation-aware."""
    try:
        vmem = pltpu.get_tpu_info().vmem_capacity_bytes
    except Exception:  # query unavailable -> assume the smallest (v7x, 64 MiB)
        vmem = 64 * 1024 * 1024
    if vmem >= 96 * 1024 * 1024:                 # v5e / v6e: 128 MiB physical
        return 100 * 1024 * 1024, 64 * 1024 * 1024
    return 48 * 1024 * 1024, 32 * 1024 * 1024    # v7x: 64 MiB physical


def _pick_tm(M, K_pad, E_pad, x_it, w_it, o_it, vmem_budget):
    """Pick the M tile: big for DMA/step-overhead amortization, VMEM-capped,
    preferring exact divisors of M (no input pad) and even grid-step counts."""
    def vmem_est(t):
        return (2 * t * K_pad * x_it            # double-buffered x tiles
                + 2 * t * E_pad * o_it          # double-buffered out tiles
                + 2 * K_pad * E_pad * w_it      # resident weight (counted 2x)
                + 2 * E_pad * 4                 # bias
                + t * E_pad * 4                 # f32 accumulator temp
                + 4 * 1024 * 1024)              # Mosaic internal scratch headroom

    tm_max = 1024
    while tm_max > 16 and vmem_est(tm_max) > vmem_budget:
        tm_max //= 2
    tm_max = max(tm_max, 16)

    if M <= tm_max:
        # Single tile; at most 15 padded rows (multiple-of-16 for bf16 packing).
        return max(16, _round_up(M, 16))

    # Divisors of M that are multiples of 16, not tiny relative to tm_max.
    cands = [d for d in range(16, tm_max + 1, 16)
             if M % d == 0 and d * 4 >= tm_max]
    if cands:
        even = [d for d in cands if (M // d) % 2 == 0]   # even split over 2 TCs
        return max(even) if even else max(cands)
    return tm_max   # fallback: pad M up to a tile multiple


@functools.partial(jax.jit, static_argnames=("patch_size", "out_dtype", "compute_dtype"))
def patch_embedding(x, weight, bias, *, patch_size, out_dtype=None,
                    compute_dtype=jnp.bfloat16):
    """Pallas PatchEmbedding forward.

    Args:
      x:      [B, C, H, W]          (NCHW, like the PyTorch module)
      weight: [embed_dim, C, P, P]  (PyTorch Conv2d weight layout)
      bias:   [embed_dim]
      patch_size:    P
      out_dtype:     output dtype (default: x.dtype; pass bf16 in bf16 models
                     to halve writeback bytes)
      compute_dtype: MXU operand dtype (default bf16; f32 accumulation always)
    Returns:
      [B, n_patches, embed_dim]
    """
    B, C, H, W = x.shape
    E = weight.shape[0]
    P = patch_size
    gh, gw = H // P, W // P
    n_patches = gh * gw
    K = C * P * P
    M = B * n_patches
    out_dtype = x.dtype if out_dtype is None else out_dtype

    K_pad = _round_up(max(K, 128), 128)           # lane-dense, MXU-aligned contraction
    E_pad = _round_up(max(E, 128), 128)           # lane-dense output stores

    # ---- input layout chain (materialized once by XLA as a bf16 slab) ----
    # (B, C, gh, P, gw, P) -> (B, gh, gw, C, P, P) -> (M, K) -> pad K -> bf16
    xp = x.reshape(B, C, gh, P, gw, P)
    xp = jnp.transpose(xp, (0, 2, 4, 1, 3, 5))
    xp = xp.reshape(M, K)
    if K_pad != K:
        xp = jnp.pad(xp, ((0, 0), (0, K_pad - K)))
    xp = xp.astype(compute_dtype)

    # ---- weight: one-time XLA transpose to (K_pad, E_pad); plain dot in-kernel ----
    w2d = weight.reshape(E, K).astype(compute_dtype)
    b2d = bias.reshape(1, E).astype(jnp.float32)   # keep elementwise math f32
    if E_pad != E or K_pad != K:
        w2d = jnp.pad(w2d, ((0, E_pad - E), (0, K_pad - K)))
        b2d = jnp.pad(b2d, ((0, 0), (0, E_pad - E)))
    w2d = jnp.transpose(w2d, (1, 0))               # (K_pad, E_pad)

    # ---- tiling ----
    vmem_limit_bytes, vmem_budget = _vmem_caps()
    itemsize = jnp.dtype(compute_dtype).itemsize
    tm = _pick_tm(M, K_pad, E_pad,
                  x_itemsize := itemsize, w_itemsize := itemsize,
                  jnp.dtype(out_dtype).itemsize, vmem_budget)
    M_pad = _round_up(M, tm)
    if M_pad != M:
        xp = jnp.pad(xp, ((0, M_pad - M), (0, 0)))

    grid = (M_pad // tm,)

    bytes_accessed = (M_pad * K_pad * itemsize            # x read
                      + K_pad * E_pad * itemsize          # weight read
                      + E_pad * 4                         # bias read
                      + M_pad * E_pad * jnp.dtype(out_dtype).itemsize)  # out write
    cost = pl.CostEstimate(flops=2 * M_pad * K_pad * E_pad,
                           transcendentals=0,
                           bytes_accessed=bytes_accessed)

    out = pl.pallas_call(
        _patch_embed_kernel,
        out_shape=jax.ShapeDtypeStruct((M_pad, E_pad), out_dtype),
        grid_spec=pltpu.PrefetchScalarGridSpec(
            num_scalar_prefetch=0,
            grid=grid,
            in_specs=[
                pl.BlockSpec((tm, K_pad), lambda i: (i, 0)),      # x streams over M
                pl.BlockSpec((K_pad, E_pad), lambda i: (0, 0)),   # weight resident
                pl.BlockSpec((1, E_pad), lambda i: (0, 0)),       # bias resident
            ],
            out_specs=pl.BlockSpec((tm, E_pad), lambda i: (i, 0)),
        ),
        compiler_params=pltpu.CompilerParams(
            dimension_semantics=("parallel",),
            vmem_limit_bytes=vmem_limit_bytes,
        ),
        cost_estimate=cost,
    )(xp, w2d, b2d)

    out = out[:M, :E]
    return out.reshape(B, n_patches, E)


def _reference(x, weight, bias, patch_size):
    """Pure-JAX reference: conv2d with stride == kernel == patch_size."""
    y = jax.lax.conv_general_dilated(
        x, weight,
        window_strides=(patch_size, patch_size),
        padding="VALID",
        dimension_numbers=("NCHW", "OIHW", "NCHW"),
        precision=jax.lax.Precision.HIGHEST,
    ) + bias.reshape(1, -1, 1, 1)
    B, E, gh, gw = y.shape
    return jnp.transpose(y.reshape(B, E, gh * gw), (0, 2, 1))


if __name__ == "__main__":
    # Small shapes consistent with the module:
    # img_size=16, patch_size=4, in_channels=4, embed_dim=32 -> n_patches=16
    B, C, IMG, P, E = 2, 4, 16, 4, 32

    key = jax.random.PRNGKey(0)
    kx, kw, kb = jax.random.split(key, 3)
    x = jax.random.normal(kx, (B, C, IMG, IMG), dtype=jnp.float32)
    # Deterministic synthetic parameters (Conv2d weight/bias shapes).
    weight = jax.random.normal(kw, (E, C, P, P), dtype=jnp.float32) * 0.02
    bias = jax.random.normal(kb, (E,), dtype=jnp.float32) * 0.02

    out = patch_embedding(x, weight, bias, patch_size=P)
    out = jax.block_until_ready(out)

    # Reference on bf16-rounded operands (the kernel computes bf16 x bf16 -> f32).
    ref = _reference(
        x.astype(jnp.bfloat16).astype(jnp.float32),
        weight.astype(jnp.bfloat16).astype(jnp.float32),
        bias, P,
    )
    assert out.shape == (B, (IMG // P) ** 2, E), out.shape
    assert jnp.allclose(out, ref, atol=1e-3, rtol=1e-3), float(
        jnp.max(jnp.abs(out - ref))
    )
    print("KERNEL_OK")
</pallas_src>

<mosaic_0001>
module attributes {stable_mosaic.version = 11 : i64} {
  func.func @_patch_embed_kernel(%arg0: i32, %arg1: memref<32x128xbf16, #tpu.memory_space<vmem>>, %arg2: memref<128x128xbf16, #tpu.memory_space<vmem>>, %arg3: memref<1x128xf32, #tpu.memory_space<vmem>>, %arg4: memref<32x128xf32, #tpu.memory_space<vmem>>) attributes {dimension_semantics = [#tpu.dimension_semantics<parallel>], iteration_bounds = array<i64: 1>, scalar_prefetch = 0 : i64, scratch_operands = 0 : i64, tpu.core_type = #tpu.core_type<tc>, window_params = [{transform_indices = @transform_0, window_bounds = array<i64: 32, 128>}, {pipeline_mode = #tpu.pipeline_mode<synchronous>, transform_indices = @transform_1, window_bounds = array<i64: 128, 128>}, {pipeline_mode = #tpu.pipeline_mode<synchronous>, transform_indices = @transform_2, window_bounds = array<i64: 1, 128>}, {transform_indices = @transform_3, window_bounds = array<i64: 32, 128>}]} {
    %c0 = arith.constant 0 : index
    %c0_0 = arith.constant 0 : index
    %0 = vector.load %arg1[%c0, %c0_0] : memref<32x128xbf16, #tpu.memory_space<vmem>>, vector<32x128xbf16>
    %c0_1 = arith.constant 0 : index
    %c0_2 = arith.constant 0 : index
    %1 = vector.load %arg2[%c0_1, %c0_2] : memref<128x128xbf16, #tpu.memory_space<vmem>>, vector<128x128xbf16>
    %cst = arith.constant dense<0.000000e+00> : vector<32x128xf32>
    %2 = tpu.matmul %0, %1, %cst {dimension_numbers = #tpu.dot_dimension_numbers<[1], [0], [0], [1], [0, 0, 1, 1], [], []>} : vector<32x128xbf16>, vector<128x128xbf16>, vector<32x128xf32> -> vector<32x128xf32>
    %c0_3 = arith.constant 0 : index
    %c0_4 = arith.constant 0 : index
    %3 = vector.load %arg3[%c0_3, %c0_4] : memref<1x128xf32, #tpu.memory_space<vmem>>, vector<1x128xf32>
    %4 = vector.broadcast %3 : vector<1x128xf32> to vector<32x128xf32>
    %5 = arith.addf %2, %4 : vector<32x128xf32>
    %c0_5 = arith.constant 0 : index
    %c0_6 = arith.constant 0 : index
    %6 = vector.load %arg4[%c0_5, %c0_6] : memref<32x128xf32, #tpu.memory_space<vmem>>, vector<32x128xf32>
    tpu.vector_store %arg4[%c0_5, %c0_6], %5 {strides = array<i32>} : memref<32x128xf32, #tpu.memory_space<vmem>>, vector<32x128xf32>,
    return
  }
  func.func @transform_0(%arg0: i32) -> (i32, i32) {
    %c0_i32 = arith.constant 0 : i32
    %c0_i32_0 = arith.constant 0 : i32
    return %arg0, %c0_i32 : i32, i32
  }
  func.func @transform_1(%arg0: i32) -> (i32, i32) {
    %c0_i32 = arith.constant 0 : i32
    %c0_i32_0 = arith.constant 0 : i32
    %c0_i32_1 = arith.constant 0 : i32
    return %c0_i32, %c0_i32_0 : i32, i32
  }
  func.func @transform_2(%arg0: i32) -> (i32, i32) {
    %c0_i32 = arith.constant 0 : i32
    %c0_i32_0 = arith.constant 0 : i32
    %c0_i32_1 = arith.constant 0 : i32
    return %c0_i32, %c0_i32_0 : i32, i32
  }
  func.func @transform_3(%arg0: i32) -> (i32, i32) {
    %c0_i32 = arith.constant 0 : i32
    %c0_i32_0 = arith.constant 0 : i32
    return %arg0, %c0_i32 : i32, i32
  }
}

</mosaic_0001>

<bundles_post_ra>
// kernel: patch_embedding.1
= control target key start
LH: loop header
LB: loop body
LE: loop exit
PB: predicated region body
PF: predicated region fallthrough
CT: control target
= control target key end

     0   :  { %s287_s0 = inlined_call_operand.vmem [shape: bf16[32,128], index: 0, kind: input, shape index: {}]   ;;  %s288_s1 = inlined_call_operand.vmem [shape: bf16[128,128], index: 1, kind: input, shape index: {}]   ;;  %s289_s2 = inlined_call_operand.vmem [shape: f32[1,128], index: 2, kind: input, shape index: {}]   ;;  %s290_s3 = inlined_call_operand.hbm [shape: f32[32,128], index: 3, kind: output, shape index: {}]  }
   0x1   :  { %v189_v0 = vld [vmem:[%s288_s1 + $0x38] sm:$0xff]  ;;  %v188_v1 = vld [vmem:[%s288_s1 + $0x30] sm:$0xff] }
   0x2   :  { %99 = vmatpush.bf16.msra.mxu0 %v189_v0  ;;  %190 = vmatpush.bf16.msra.mxu1 %v189_v0 }
   0x3   :  { %8 = vsyncpa [#allocation3], 0  ;;  %v187_v2 = vld [vmem:[%s288_s1 + $0x28] sm:$0xff]  ;;  %v186_v3 = vld [vmem:[%s288_s1 + $0x20] sm:$0xff]  ;;  %s230_s10 = smov 8  }
   0x4   :  { %v185_v4 = vld [vmem:[%s288_s1 + $0x18] sm:$0xff]  ;;  %v184_v5 = vld [vmem:[%s288_s1 + $0x10] sm:$0xff]  ;;  %v183_v6 = vld [vmem:[%s288_s1 + $0x8] sm:$0xff] }
   0x5   :  { %v182_v7 = vld [vmem:[%s288_s1] sm:$0xff]  ;;  %v181_v9 = vld [vmem:[%s287_s0 + $0x8] sm:$0xff]  ;;  %s228_s1 = smov [#allocation2]  }
   0x6   :  { %100 = vmatpush.bf16.msra.mxu0 %v188_v1  ;;  %191 = vmatpush.bf16.msra.mxu1 %v188_v1  ;;  %v180_v8 = vld [vmem:[%s287_s0] sm:$0xff]  ;;  %s126_s7 = sshll.u32 %s228_s1, 4  ;;  %s128_s0 = sshll.u32 %s290_s3, 4  ;;  %s127_s7 = int_to_ptr.vmem [resolvable:$true] %s126_s7  ;;  %s129_s0 = int_to_ptr.hbm [resolvable:$true] %s128_s0 }
   0x7   :  { %v201_v10 = vld [vmem:[%s289_s2] ss:$0 sm:$0xff]  ;;  %s229_s2 = smov 128  }
   0xa   :  { %101 = vmatpush.bf16.msra.mxu0 %v187_v2  ;;  %192 = vmatpush.bf16.msra.mxu1 %v187_v2 }
   0xe   :  { %102 = vmatpush.bf16.msra.mxu0 %v186_v3  ;;  %193 = vmatpush.bf16.msra.mxu1 %v186_v3 }
  0x12   :  { %103 = vmatpush.bf16.msra.mxu0 %v185_v4  ;;  %194 = vmatpush.bf16.msra.mxu1 %v185_v4 }
  0x16   :  { %104 = vmatpush.bf16.msra.mxu0 %v184_v5  ;;  %195 = vmatpush.bf16.msra.mxu1 %v184_v5 }
  0x1a   :  { %105 = vmatpush.bf16.msra.mxu0 %v183_v6  ;;  %196 = vmatpush.bf16.msra.mxu1 %v183_v6 }
  0x1e   :  { %106 = vmatpush.bf16.msra.mxu0 %v182_v7  ;;  %197 = vmatpush.bf16.msra.mxu1 %v182_v7 }
  0x21   :  { %107 = vmatmul.bf16.vlgmr.msra.gmra.mxu0 %v180_v8  ;;  %112 = vmatmul.bf16.vlgmr.msra.gmra.mxu1 %v181_v9 }
  0x9e   :  { %v108_v11 = vpop.f32.mrf.mxu0  ;;  %v113_v12 = vpop.f32.mrf.mxu1 }
  0x9f   :  { %v109_v13 = vadd.f32 %v201_v10, %v108_v11  ;;  %v114_v14 = vadd.f32 %v201_v10, %v113_v12 }
  0xa1   :  { %118 = vst [vmem:[#allocation2] sm:$0xff] %v109_v13 }
  0xa2   :  { %120 = vst [vmem:[#allocation2 + $0x10] sm:$0xff] %v114_v14 }
  0xa6   :  { %v110_v15 = vpop.f32.mrf.mxu0  ;;  %v115_v16 = vpop.f32.mrf.mxu1 }
  0xa7   :  { %v111_v17 = vadd.f32 %v201_v10, %v110_v15  ;;  %v116_v18 = vadd.f32 %v201_v10, %v115_v16 }
  0xa9   :  { %119 = vst [vmem:[#allocation2 + $0x8] sm:$0xff] %v111_v17 }
  0xaa   :  { %121 = vst [vmem:[#allocation2 + $0x18] sm:$0xff] %v116_v18 }
  0xab   :  { %134 = dma.vmem_to_hbm [thread:$0]  %s127_s7, 512, %s129_s0, [#allocation3], %s229_s2, %s229_s2, %s230_s10  }
  0xac   :  { %226 = dma.done.wait [#allocation3], 512  }
  0xad   :  { %227 = vsyncadd [#allocation3], 4294966784 }
  0xae   :  { %139 = vsyncpa [#allocation3], 1 }

</bundles_post_ra>
